<compile_context>
chip_gen: v7x
topology: tpu7x:2x2x1
jax: 0.10.0
libtpu: 0.0.40
codegen_flags: <defaults>
</compile_context>

<pallas_src>
import functools

import jax
import jax.numpy as jnp
from jax.experimental import pallas as pl
from jax.experimental.pallas import tpu as pltpu

# Logical (PyTorch) dims and lane-padded dims.
IN_DIM, H1_DIM, H2_DIM, OUT_DIM = 10, 50, 100, 100
IN_PAD, H1_PAD, H2_PAD, OUT_PAD = 128, 128, 128, 128


def mlp_kernel(x_ref, w1_ref, b1_ref, w2_ref, b2_ref, w3_ref, b3_ref, o_ref):
    # Matmul operands in bf16 (fast MXU path, half the weight/activation traffic);
    # accumulation and all elementwise work (bias, ReLU, sigmoid) in f32.
    x = x_ref[...]                                     # already bf16

    # fc1 + relu  (zero-padded input cols x zero-padded w1 rows contribute 0)
    h1 = jnp.dot(x, w1_ref[...], preferred_element_type=jnp.float32)
    h1 = jnp.maximum(h1 + b1_ref[...], 0.0)            # padded cols: relu(0+0) = 0

    # fc2 + relu
    h2 = jnp.dot(h1.astype(jnp.bfloat16), w2_ref[...],
                 preferred_element_type=jnp.float32)
    h2 = jnp.maximum(h2 + b2_ref[...], 0.0)            # padded cols stay 0

    # fc3 + sigmoid (padded output cols hold sigmoid(0)=0.5; sliced off on host)
    z = jnp.dot(h2.astype(jnp.bfloat16), w3_ref[...],
                preferred_element_type=jnp.float32)
    z = z + b3_ref[...]
    o_ref[...] = jax.nn.sigmoid(z).astype(o_ref.dtype)


def simplenet_forward(x, padded_params, *, tile_b=256):
    """x: [B, 10] f32. padded_params: lane-padded (bf16 weights, f32 biases)."""
    w1, b1, w2, b2, w3, b3 = padded_params
    B = x.shape[0]

    # tile_b multiple of 16 -> bf16 activations sublane-full, f32 output (8,128)-tiled.
    tile_b = max(16, (tile_b // 16) * 16)
    b_pad = pl.cdiv(B, tile_b) * tile_b

    # Pad batch to a multiple of tile_b and input features to the lane width,
    # casting to bf16 so the per-tile input DMA is half the f32 size.
    x_p = jnp.zeros((b_pad, IN_PAD), jnp.bfloat16)
    x_p = x_p.at[:B, :IN_DIM].set(x.astype(jnp.bfloat16))

    grid = (b_pad // tile_b,)
    const = lambda i: (0, 0)  # weights/biases resident in VMEM across all grid steps

    out_p = pl.pallas_call(
        mlp_kernel,
        out_shape=jax.ShapeDtypeStruct((b_pad, OUT_PAD), jnp.float32),
        grid_spec=pltpu.PrefetchScalarGridSpec(
            num_scalar_prefetch=0,
            grid=grid,
            in_specs=[
                pl.BlockSpec((tile_b, IN_PAD), lambda i: (i, 0)),   # x tile (pipelined)
                pl.BlockSpec((IN_PAD, H1_PAD), const),              # w1
                pl.BlockSpec((1, H1_PAD), const),                   # b1
                pl.BlockSpec((H1_PAD, H2_PAD), const),              # w2
                pl.BlockSpec((1, H2_PAD), const),                   # b2
                pl.BlockSpec((H2_PAD, OUT_PAD), const),             # w3
                pl.BlockSpec((1, OUT_PAD), const),                  # b3
            ],
            out_specs=pl.BlockSpec((tile_b, OUT_PAD), lambda i: (i, 0)),  # lane-dense
        ),
        compiler_params=pltpu.CompilerParams(
            dimension_semantics=("parallel",),  # batch tiles independent (v7x 2 TCs)
        ),
    )(x_p, w1, b1, w2, b2, w3, b3)

    # Strip batch and output-feature padding (padded cols contain sigmoid(0)=0.5).
    return out_p[:B, :OUT_DIM]


def init_params(key):
    """PyTorch nn.Linear-style init (uniform +/- 1/sqrt(fan_in)), unpadded f32,
    weights stored [in, out] for the x @ W convention."""
    dims = [(IN_DIM, H1_DIM), (H1_DIM, H2_DIM), (H2_DIM, OUT_DIM)]
    params = []
    for fan_in, fan_out in dims:
        kw, kb, key = jax.random.split(key, 3)
        bound = 1.0 / jnp.sqrt(fan_in)
        w = jax.random.uniform(kw, (fan_in, fan_out), jnp.float32, -bound, bound)
        b = jax.random.uniform(kb, (1, fan_out), jnp.float32, -bound, bound)
        params += [w, b]
    return tuple(params)


def pad_params(params):
    """Zero-pad every feature dim to 128; weights -> bf16, biases stay f32."""
    w1, b1, w2, b2, w3, b3 = params

    def pad_w(w, rp, cp):
        out = jnp.zeros((rp, cp), jnp.float32).at[: w.shape[0], : w.shape[1]].set(w)
        return out.astype(jnp.bfloat16)

    def pad_b(b, cp):
        return jnp.zeros((1, cp), jnp.float32).at[:, : b.shape[1]].set(b)

    return (
        pad_w(w1, IN_PAD, H1_PAD), pad_b(b1, H1_PAD),
        pad_w(w2, H1_PAD, H2_PAD), pad_b(b2, H2_PAD),
        pad_w(w3, H2_PAD, OUT_PAD), pad_b(b3, OUT_PAD),
    )


def reference_forward(x, params):
    """Pure-JAX f32 reference (unpadded)."""
    w1, b1, w2, b2, w3, b3 = params
    h1 = jnp.maximum(x @ w1 + b1, 0.0)
    h2 = jnp.maximum(h1 @ w2 + b2, 0.0)
    return jax.nn.sigmoid(h2 @ w3 + b3)


if __name__ == "__main__":
    key = jax.random.PRNGKey(0)
    k_params, k_x = jax.random.split(key)
    params = init_params(k_params)
    padded_params = pad_params(params)

    B = 32                      # small demo batch; grid of 2 tiles exercises pipelining
    x = jax.random.normal(k_x, (B, IN_DIM), jnp.float32)

    fwd = jax.jit(functools.partial(simplenet_forward, tile_b=16))
    out = jax.block_until_ready(fwd(x, padded_params))

    assert out.shape == (B, OUT_DIM)
    assert bool(jnp.all(out >= 0.0)) and bool(jnp.all(out <= 1.0))

    # Numerical check vs. f32 reference (kernel uses bf16 matmul operands).
    ref = reference_forward(x, params)
    assert bool(jnp.all(jnp.abs(out - ref) < 2e-2)), float(jnp.max(jnp.abs(out - ref)))

    print("KERNEL_OK")
</pallas_src>

<mosaic_0001>
module attributes {stable_mosaic.version = 11 : i64} {
  func.func @mlp_kernel(%arg0: i32, %arg1: memref<16x128xbf16, #tpu.memory_space<vmem>>, %arg2: memref<128x128xbf16, #tpu.memory_space<vmem>>, %arg3: memref<1x128xf32, #tpu.memory_space<vmem>>, %arg4: memref<128x128xbf16, #tpu.memory_space<vmem>>, %arg5: memref<1x128xf32, #tpu.memory_space<vmem>>, %arg6: memref<128x128xbf16, #tpu.memory_space<vmem>>, %arg7: memref<1x128xf32, #tpu.memory_space<vmem>>, %arg8: memref<16x128xf32, #tpu.memory_space<vmem>>) attributes {dimension_semantics = [#tpu.dimension_semantics<parallel>], iteration_bounds = array<i64: 2>, scalar_prefetch = 0 : i64, scratch_operands = 0 : i64, tpu.core_type = #tpu.core_type<tc>, window_params = [{transform_indices = @transform_0, window_bounds = array<i64: 16, 128>}, {pipeline_mode = #tpu.pipeline_mode<synchronous>, transform_indices = @transform_1, window_bounds = array<i64: 128, 128>}, {pipeline_mode = #tpu.pipeline_mode<synchronous>, transform_indices = @transform_2, window_bounds = array<i64: 1, 128>}, {pipeline_mode = #tpu.pipeline_mode<synchronous>, transform_indices = @transform_3, window_bounds = array<i64: 128, 128>}, {pipeline_mode = #tpu.pipeline_mode<synchronous>, transform_indices = @transform_4, window_bounds = array<i64: 1, 128>}, {pipeline_mode = #tpu.pipeline_mode<synchronous>, transform_indices = @transform_5, window_bounds = array<i64: 128, 128>}, {pipeline_mode = #tpu.pipeline_mode<synchronous>, transform_indices = @transform_6, window_bounds = array<i64: 1, 128>}, {transform_indices = @transform_7, window_bounds = array<i64: 16, 128>}]} {
    %c0 = arith.constant 0 : index
    %c0_0 = arith.constant 0 : index
    %0 = vector.load %arg1[%c0, %c0_0] : memref<16x128xbf16, #tpu.memory_space<vmem>>, vector<16x128xbf16>
    %c0_1 = arith.constant 0 : index
    %c0_2 = arith.constant 0 : index
    %1 = vector.load %arg2[%c0_1, %c0_2] : memref<128x128xbf16, #tpu.memory_space<vmem>>, vector<128x128xbf16>
    %cst = arith.constant dense<0.000000e+00> : vector<16x128xf32>
    %2 = tpu.matmul %0, %1, %cst {dimension_numbers = #tpu.dot_dimension_numbers<[1], [0], [0], [1], [0, 0, 1, 1], [], []>} : vector<16x128xbf16>, vector<128x128xbf16>, vector<16x128xf32> -> vector<16x128xf32>
    %c0_3 = arith.constant 0 : index
    %c0_4 = arith.constant 0 : index
    %3 = vector.load %arg3[%c0_3, %c0_4] : memref<1x128xf32, #tpu.memory_space<vmem>>, vector<1x128xf32>
    %4 = vector.broadcast %3 : vector<1x128xf32> to vector<16x128xf32>
    %5 = arith.addf %2, %4 : vector<16x128xf32>
    %cst_5 = arith.constant 0.000000e+00 : f32
    %6 = vector.broadcast %cst_5 : f32 to vector<16x128xf32>
    %7 = arith.maximumf %5, %6 : vector<16x128xf32>
    %8 = arith.truncf %7 : vector<16x128xf32> to vector<16x128xbf16>
    %c0_6 = arith.constant 0 : index
    %c0_7 = arith.constant 0 : index
    %9 = vector.load %arg4[%c0_6, %c0_7] : memref<128x128xbf16, #tpu.memory_space<vmem>>, vector<128x128xbf16>
    %cst_8 = arith.constant dense<0.000000e+00> : vector<16x128xf32>
    %10 = tpu.matmul %8, %9, %cst_8 {dimension_numbers = #tpu.dot_dimension_numbers<[1], [0], [0], [1], [0, 0, 1, 1], [], []>} : vector<16x128xbf16>, vector<128x128xbf16>, vector<16x128xf32> -> vector<16x128xf32>
    %c0_9 = arith.constant 0 : index
    %c0_10 = arith.constant 0 : index
    %11 = vector.load %arg5[%c0_9, %c0_10] : memref<1x128xf32, #tpu.memory_space<vmem>>, vector<1x128xf32>
    %12 = vector.broadcast %11 : vector<1x128xf32> to vector<16x128xf32>
    %13 = arith.addf %10, %12 : vector<16x128xf32>
    %cst_11 = arith.constant 0.000000e+00 : f32
    %14 = vector.broadcast %cst_11 : f32 to vector<16x128xf32>
    %15 = arith.maximumf %13, %14 : vector<16x128xf32>
    %16 = arith.truncf %15 : vector<16x128xf32> to vector<16x128xbf16>
    %c0_12 = arith.constant 0 : index
    %c0_13 = arith.constant 0 : index
    %17 = vector.load %arg6[%c0_12, %c0_13] : memref<128x128xbf16, #tpu.memory_space<vmem>>, vector<128x128xbf16>
    %cst_14 = arith.constant dense<0.000000e+00> : vector<16x128xf32>
    %18 = tpu.matmul %16, %17, %cst_14 {dimension_numbers = #tpu.dot_dimension_numbers<[1], [0], [0], [1], [0, 0, 1, 1], [], []>} : vector<16x128xbf16>, vector<128x128xbf16>, vector<16x128xf32> -> vector<16x128xf32>
    %c0_15 = arith.constant 0 : index
    %c0_16 = arith.constant 0 : index
    %19 = vector.load %arg7[%c0_15, %c0_16] : memref<1x128xf32, #tpu.memory_space<vmem>>, vector<1x128xf32>
    %20 = vector.broadcast %19 : vector<1x128xf32> to vector<16x128xf32>
    %21 = arith.addf %18, %20 : vector<16x128xf32>
    %22 = arith.negf %21 : vector<16x128xf32>
    %23 = math.exp %22 : vector<16x128xf32>
    %cst_17 = arith.constant 1.000000e+00 : f32
    %24 = vector.broadcast %cst_17 : f32 to vector<16x128xf32>
    %25 = arith.addf %24, %23 : vector<16x128xf32>
    %26 = arith.divf %24, %25 : vector<16x128xf32>
    %c0_18 = arith.constant 0 : index
    %c0_19 = arith.constant 0 : index
    %27 = vector.load %arg8[%c0_18, %c0_19] : memref<16x128xf32, #tpu.memory_space<vmem>>, vector<16x128xf32>
    tpu.vector_store %arg8[%c0_18, %c0_19], %26 {strides = array<i32>} : memref<16x128xf32, #tpu.memory_space<vmem>>, vector<16x128xf32>,
    return
  }
  func.func @transform_0(%arg0: i32) -> (i32, i32) {
    %c0_i32 = arith.constant 0 : i32
    %c0_i32_0 = arith.constant 0 : i32
    return %arg0, %c0_i32 : i32, i32
  }
  func.func @transform_1(%arg0: i32) -> (i32, i32) {
    %c0_i32 = arith.constant 0 : i32
    %c0_i32_0 = arith.constant 0 : i32
    %c0_i32_1 = arith.constant 0 : i32
    return %c0_i32, %c0_i32_0 : i32, i32
  }
  func.func @transform_2(%arg0: i32) -> (i32, i32) {
    %c0_i32 = arith.constant 0 : i32
    %c0_i32_0 = arith.constant 0 : i32
    %c0_i32_1 = arith.constant 0 : i32
    return %c0_i32, %c0_i32_0 : i32, i32
  }
  func.func @transform_3(%arg0: i32) -> (i32, i32) {
    %c0_i32 = arith.constant 0 : i32
    %c0_i32_0 = arith.constant 0 : i32
    %c0_i32_1 = arith.constant 0 : i32
    return %c0_i32, %c0_i32_0 : i32, i32
  }
  func.func @transform_4(%arg0: i32) -> (i32, i32) {
    %c0_i32 = arith.constant 0 : i32
    %c0_i32_0 = arith.constant 0 : i32
    %c0_i32_1 = arith.constant 0 : i32
    return %c0_i32, %c0_i32_0 : i32, i32
  }
  func.func @transform_5(%arg0: i32) -> (i32, i32) {
    %c0_i32 = arith.constant 0 : i32
    %c0_i32_0 = arith.constant 0 : i32
    %c0_i32_1 = arith.constant 0 : i32
    return %c0_i32, %c0_i32_0 : i32, i32
  }
  func.func @transform_6(%arg0: i32) -> (i32, i32) {
    %c0_i32 = arith.constant 0 : i32
    %c0_i32_0 = arith.constant 0 : i32
    %c0_i32_1 = arith.constant 0 : i32
    return %c0_i32, %c0_i32_0 : i32, i32
  }
  func.func @transform_7(%arg0: i32) -> (i32, i32) {
    %c0_i32 = arith.constant 0 : i32
    %c0_i32_0 = arith.constant 0 : i32
    return %arg0, %c0_i32 : i32, i32
  }
}

</mosaic_0001>

<bundles_post_ra>
// kernel: simplenet_forward.1
= control target key start
LH: loop header
LB: loop body
LE: loop exit
PB: predicated region body
PF: predicated region fallthrough
CT: control target
= control target key end

     0   :  { %12 = vsyncpa [#allocation3], 0  ;;  %s1423_s0 = inlined_call_operand.vmem [shape: bf16[32,128], index: 0, kind: input, shape index: {}]   ;;  %s1424_s1 = inlined_call_operand.vmem [shape: bf16[128,128], index: 1, kind: input, shape index: {}]   ;;  %s1425_s2 = inlined_call_operand.vmem [shape: f32[1,128], index: 2, kind: input, shape index: {}]   ;;  %s1426_s3 = inlined_call_operand.hbm [shape: bf16[128,128], index: 3, kind: input, shape index: {}]   ;;  %s1427_s4 = inlined_call_operand.vmem [shape: f32[1,128], index: 4, kind: input, shape index: {}]   ;;  %s1428_s5 = inlined_call_operand.hbm [shape: bf16[128,128], index: 5, kind: input, shape index: {}]   ;;  %s1429_s6 = inlined_call_operand.vmem [shape: f32[1,128], index: 6, kind: input, shape index: {}]   ;;  %s1430_s7 = inlined_call_operand.hbm [shape: f32[32,128], index: 7, kind: output, shape index: {}]  }
   0x1   :  { %13 = vsyncpa [#allocation6], 0 }
   0x2   :  { %14 = vsyncpa [#allocation4], 0 }
   0x3   :  { %16 = vsyncpa [#allocation4 + $0x1], 0  ;;  %s1183_s24 = smov 0   ;;  %s1185_s25 = smov 0  }
   0x4   :  { %s1187_s26 = smov 0   ;;  %s1189_s27 = smov 0  }
   0x5 LB: > { %s1204_s28 = sadd.s32 4294967295, %s1132_s27   ;;  %s773_s29 = sadd.s32 4294967294, %s1132_s27   ;;  %s1132_s27 = sphi %s1189_s27, %s1450_s27   ;;  %s1128_s26 = sphi %s1187_s26, %s1449_s26   ;;  %s1124_s25 = sphi %s1185_s25, %s1448_s25   ;;  %s1120_s24 = sphi %s1183_s24, %s1447_s24  }
   0x6   : > { %s1208_s30 = sadd.s32 1, %s1132_s27   ;;  %s181_s8 = sadd.s32 1, %s1128_s26 }
   0x7   : > { %s178_s9 = ssub.s32 %s1132_s27, %s1208_s30  ;;  %p191_p0 = scmp.ne.s32.totalorder %s1128_s26, %s1124_s25 }
   0x8   : > { %p179_p1 = scmp.eq.s32.totalorder %s178_s9, 0  ;;  %p192_p2 = scmp.eq.s32.totalorder %s1204_s28, 1 }
   0x9   : > { %p197_p3 = scmp.ne.s32.totalorder %s1124_s25, %s1120_s24  ;;  %p198_p4 = scmp.eq.s32.totalorder %s773_s29, 1 }
   0xa   : > { %s1219_s10 = scalar_select %p179_p1, %s1128_s26, %s181_s8  }
   0xb   : > { %p1221_p5 = por %p192_p2, %p191_p0  ;;  %p1225_p6 = por %p198_p4, %p197_p3 }
   0xc   : > { %1434 = sst [smem:[#allocation11_spill]] %s1219_s10  ;;  %p774_p7 = scmp.ge.s32.totalorder %s1132_s27, 1 }
   0xd   : > { %s1435_s11 = scalar_select %p1221_p5, 1, 0 }
   0xe   : > { %s1436_s12 = scalar_select %p1225_p6, 1, 0 }
   0xf   : > { %p205_p8 = scmp.lt.s32.totalorder %s1132_s27, 3  ;;  %p1431_p9 = scmp.eq.s32.totalorder %s1204_s28, 0 }
  0x10   : > { %s1134_s14 = smov [#allocation2]   ;;  %s1135_s17 = smov [#allocation5]  }
  0x11   : > { %p1232_p10 = pnand %p774_p7, %p205_p8  ;;  %s223_s15 = sshll.u32 %s1134_s14, 4  ;;  %s224_s15 = int_to_ptr.vmem [resolvable:$true] %s223_s15 }
  0x12   : > { %s239_s18 = sshll.u32 %s1135_s17, 4  ;;  %s1006_s21 = scalar_lea.hbm %s1426_s3, 1024  ;;  %s1244_s18 = int_to_ptr.vmem [resolvable:$true] %s239_s18 }
  0x13   : > { %s1437_s13 = scalar_select %p1232_p10, 1, 0 }
  0x14   : > { %p917_p11 = pneg %p1232_p10  ;;  %p1007_p13 = scmp.ne.s32.totalorder %s1426_s3, %s1006_s21 }
  0x15   : > { %p1013_p3 = scmp.lt.u32.totalorder %s1006_s21, %s1426_s3 }
  0x16   : > { %p1240_p12 = pnand %p1431_p9, %p917_p11 }
  0x18   : > { %p1008_p0 = pneg %p1240_p12 }
  0x1a   : > { %p1009_p1 = pnand %p1008_p0, %p1007_p13 }
  0x1c   : > { %p1010_p2 = pneg %p1009_p1 }
  0x1e   : > { %p1015_p4 = pnand %p1013_p3, %p1010_p2 }
  0x20   : > { %1018 = shalt.err (!%p1015_p4)
}
  0x21   : > { %s1019_s9 = scalar_lea.vmem %s224_s15, 1024  ;;  %p1027_p9 = scmp.lt.s32.totalorder %s224_s15, %s224_s15 }
  0x22   : > { %p1020_p7 = scmp.ne.s32.totalorder %s224_s15, %s1019_s9  ;;  %p1028_p6 = scmp.lt.s32.totalorder %s1019_s9, %s1019_s9 }
  0x24   : > { %p1022_p8 = pnand %p1020_p7, %p1008_p0  ;;  %p1029_p5 = por %p1028_p6, %p1027_p9 }
  0x26   : > { %p1023_p11 = pneg %p1022_p8 }
  0x28   : > { %p1030_p10 = pnand %p1029_p5, %p1023_p11 }
  0x2a   : > { %1033 = shalt.err (!%p1030_p10)
}
  0x2b   : > { %s1136_s14 = smov 64   ;;  %s1137_s17 = smov 4  }
  0x2c   : > { %920 = dma.hbm_to_vmem [thread:$0]  (!%p1240_p12), %s1426_s3, 1024, %s224_s15, [#allocation3], %s1136_s14, %s1136_s14, %s1137_s17  }
  0x2d   : > { %s1034_s23 = scalar_lea.hbm %s1428_s5, 1024 }
  0x2e   : > { %p1035_p13 = scmp.ne.s32.totalorder %s1428_s5, %s1034_s23  ;;  %p1041_p9 = scmp.lt.u32.totalorder %s1034_s23, %s1428_s5 }
  0x30   : > { %p1037_p5 = pnand %p1035_p13, %p1008_p0 }
  0x32   : > { %p1038_p6 = pneg %p1037_p5 }
  0x34   : > { %p1043_p10 = pnand %p1041_p9, %p1038_p6 }
  0x36   : > { %1046 = shalt.err (!%p1043_p10)
}
  0x37   : > { %s1047_s15 = scalar_lea.vmem %s1244_s18, 1024  ;;  %p1055_p4 = scmp.lt.s32.totalorder %s1244_s18, %s1244_s18 }
  0x38   : > { %p1048_p1 = scmp.ne.s32.totalorder %s1244_s18, %s1047_s15  ;;  %p1056_p7 = scmp.lt.s32.totalorder %s1047_s15, %s1047_s15 }
  0x3a   : > { %p1050_p2 = pnand %p1048_p1, %p1008_p0  ;;  %p1057_p8 = por %p1056_p7, %p1055_p4 }
  0x3c   : > { %p1051_p3 = pneg %p1050_p2 }
  0x3e   : > { %p1058_p11 = pnand %p1057_p8, %p1051_p3 }
  0x40   : > { %1061 = shalt.err (!%p1058_p11)
}
  0x41   : > { %923 = dma.hbm_to_vmem [thread:$0]  (!%p1240_p12), %s1428_s5, 1024, %s1244_s18, [#allocation6], %s1136_s14, %s1136_s14, %s1137_s17  }
  0x42   : > { %p1439_p13 = scmp.ne.s32.totalorder %s1437_s13, 0 }
  0x43   : > { %p1440_p5 = scmp.eq.s32.totalorder (!%p1439_p13), %s1204_s28, 0 }
  0x44   : > { %267 = sbr.rel (%p1439_p13) target bundleno = 811 (0x32b), region = 48 }
  0x4b   : > { %1107 = dma.done.wait (%p1440_p5), [#allocation3], 1024   ;;  %p1441_p0 = pmov %p1440_p5 }
  0x4d   : > { %1109 = vsyncadd (%p1441_p0), [#allocation3], 4294966272  ;;  %p1442_p6 = pmov %p1441_p0 }
  0x4e   : > { %p1443_p9 = pmov %p1441_p0 }
  0x4f   : > { %1111 = dma.done.wait (%p1442_p6), [#allocation6], 1024  }
  0x50   : > { %1113 = vsyncadd (%p1443_p9), [#allocation6], 4294966272  ;;  %s782_s16 = sshll.u32 %s1204_s28, 1  ;;  %v1138_v0 = vmov 0.0   ;;  %vm1139_vm0 = vmmov 0   ;;  %v973_v1 = vld [vmem:[%s1424_s1] sm:$0xff]  }
  0x51   : > { %847 = vmatprep.subr.bf16.mxu0 %v1138_v0  ;;  %863 = vmatprep.mubr.msk.bf16.mxu0 %vm1139_vm0, %v1138_v0  ;;  %p304_p12 = scmp.lt.s32.totalorder %s782_s16, 3  ;;  %v974_v2 = vld [vmem:[%s1424_s1 + $0x8] sm:$0xff]   ;;  %v975_v3 = vld [vmem:[%s1424_s1 + $0x10] sm:$0xff]   ;;  %v982_v4 = vld [vmem:[#allocation2] sm:$0xff]   ;;  %s300_s15 = sand.u32 1, %s1124_s25  }
  0x52   : > { %867 = vmatprep.subr.bf16.mxu1 %v1138_v0  ;;  %883 = vmatprep.mubr.msk.bf16.mxu1 %vm1139_vm0, %v1138_v0  ;;  %v976_v5 = vld [vmem:[%s1424_s1 + $0x18] sm:$0xff]   ;;  %v983_v6 = vld [vmem:[#allocation2 + $0x8] sm:$0xff]   ;;  %v977_v7 = vld [vmem:[%s1424_s1 + $0x20] sm:$0xff]   ;;  %s781_s10 = sshll.u32 %s300_s15, 4  ;;  %s819_s19 = sshll.u32 %s1204_s28, 8 }
  0x53   : > { %s1452_s16 = smov (!%p304_p12, %s782_s16), 3  ;;  %848 = vmatpush3.bf16.msra.mxu0 %v973_v1  ;;  %868 = vmatpush3.bf16.msra.mxu1 %v982_v4  ;;  %v984_v8 = vld [vmem:[#allocation2 + $0x10] sm:$0xff]   ;;  %v978_v9 = vld [vmem:[%s1424_s1 + $0x28] sm:$0xff]   ;;  %v985_v10 = vld [vmem:[#allocation2 + $0x18] sm:$0xff]   ;;  %s1378_s17 = scalar_lea.hbm %s1430_s7, %s819_s19 }
  0x54   : > { %849 = vmatprep.subr.bf16.mxu0 %v1138_v0  ;;  %s783_s20 = sshll.u32 %s1452_s16, 2  ;;  %869 = vmatprep.subr.bf16.mxu1 %v1138_v0  ;;  %v979_v11 = vld [vmem:[%s1424_s1 + $0x30] sm:$0xff]   ;;  %v986_v12 = vld [vmem:[#allocation2 + $0x20] sm:$0xff]   ;;  %v980_v13 = vld [vmem:[%s1424_s1 + $0x38] sm:$0xff]   ;;  %s302_s16 = scalar_lea.vmem [#allocation7], %s781_s10 }
  0x55   : > { %s1324_s8 = scalar_lea.vmem %s1423_s0, %s783_s20  ;;  %v987_v14 = vld [vmem:[#allocation2 + $0x28] sm:$0xff]   ;;  %v988_v16 = vld [vmem:[#allocation2 + $0x30] sm:$0xff]   ;;  %v989_v17 = vld [vmem:[#allocation2 + $0x38] sm:$0xff]   ;;  %s689_s13 = sshll.u32 %s302_s16, 4  ;;  %s1380_s13 = int_to_ptr.vmem [resolvable:$true] %s689_s13 }
  0x56   : > { %v981_v15 = vld [vmem:[%s1324_s8] sm:$0xff]   ;;  %v991_v19 = vld [vmem:[#allocation5 + $0x8] sm:$0xff]   ;;  %v992_v20 = vld [vmem:[#allocation5 + $0x10] sm:$0xff]   ;;  %s1382_s20 = scalar_lea.sflag [#allocation4], %s300_s15  ;;  %s1062_s21 = scalar_lea.vmem %s1380_s13, 256 }
  0x57   : > { %850 = vmatpush3.bf16.msra.mxu0 %v974_v2  ;;  %870 = vmatpush3.bf16.msra.mxu1 %v983_v6  ;;  %v990_v18 = vld [vmem:[#allocation5] sm:$0xff]   ;;  %v993_v21 = vld [vmem:[#allocation5 + $0x18] sm:$0xff]   ;;  %v995_v23 = vld [vmem:[#allocation5 + $0x28] sm:$0xff]   ;;  %p1063_p10 = scmp.ne.s32.totalorder %s1380_s13, %s1062_s21  ;;  %p1444_p1 = scmp.ne.s32.totalorder %s1435_s11, 0 }
  0x58   : > { %851 = vmatprep.subr.bf16.mxu0 %v1138_v0  ;;  %871 = vmatprep.subr.bf16.mxu1 %v1138_v0  ;;  %v994_v22 = vld [vmem:[#allocation5 + $0x20] sm:$0xff]   ;;  %v996_v34 = vld [vmem:[#allocation5 + $0x30] sm:$0xff]   ;;  %v997_v35 = vld [vmem:[#allocation5 + $0x38] sm:$0xff]   ;;  %s1140_s28 = smov [#allocation7]  }
  0x59   : > { %v784_v24 = vld [vmem:[%s1425_s2] ss:$0 sm:$0xff]  ;;  %p1064_p2 = pnand %p1063_p10, %p1444_p1  ;;  %s1066_s22 = sshll.u32 %s1140_s28, 4  ;;  %s1067_s22 = int_to_ptr.vmem [resolvable:$false] %s1066_s22 }
  0x5a   : > { %v794_v36 = vld [vmem:[%s1427_s4] ss:$0 sm:$0xff]  ;;  %s1068_s23 = scalar_lea.vmem %s1067_s22, 512  ;;  %p1069_p4 = scmp.lt.s32.totalorder %s1380_s13, %s1067_s22 }
  0x5b   : > { %852 = vmatpush3.bf16.msra.mxu0 %v975_v3  ;;  %872 = vmatpush3.bf16.msra.mxu1 %v984_v8  ;;  %v803_v46 = vld [vmem:[%s1429_s6] ss:$0 sm:$0xff]  ;;  %p1065_p3 = pneg %p1064_p2  ;;  %p1070_p7 = scmp.lt.s32.totalorder %s1068_s23, %s1062_s21 }
  0x5c   : > { %853 = vmatprep.subr.bf16.mxu0 %v1138_v0  ;;  %873 = vmatprep.subr.bf16.mxu1 %v1138_v0 }
  0x5d   : > { %p1071_p8 = por %p1070_p7, %p1069_p4 }
  0x5f   : > { %854 = vmatpush3.bf16.msra.mxu0 %v976_v5  ;;  %874 = vmatpush3.bf16.msra.mxu1 %v985_v10  ;;  %p1072_p11 = pnand %p1071_p8, %p1065_p3 }
  0x60   : > { %855 = vmatprep.subr.bf16.mxu0 %v1138_v0  ;;  %875 = vmatprep.subr.bf16.mxu1 %v1138_v0 }
  0x63   : > { %856 = vmatpush3.bf16.msra.mxu0 %v977_v7  ;;  %876 = vmatpush3.bf16.msra.mxu1 %v986_v12 }
  0x64   : > { %857 = vmatprep.subr.bf16.mxu0 %v1138_v0  ;;  %877 = vmatprep.subr.bf16.mxu1 %v1138_v0 }
  0x67   : > { %858 = vmatpush3.bf16.msra.mxu0 %v978_v9  ;;  %878 = vmatpush3.bf16.msra.mxu1 %v987_v14 }
  0x68   : > { %859 = vmatprep.subr.bf16.mxu0 %v1138_v0  ;;  %879 = vmatprep.subr.bf16.mxu1 %v1138_v0 }
  0x6b   : > { %860 = vmatpush3.bf16.msra.mxu0 %v979_v11  ;;  %880 = vmatpush3.bf16.msra.mxu1 %v988_v16 }
  0x6c   : > { %861 = vmatprep.subr.bf16.mxu0 %v1138_v0  ;;  %881 = vmatprep.subr.bf16.mxu1 %v1138_v0 }
  0x6f   : > { %862 = vmatpush3.bf16.msra.mxu0 %v980_v13  ;;  %882 = vmatpush3.bf16.msra.mxu1 %v989_v17 }
  0x70   : > { %887 = vmatprep.subr.bf16.mxu0 %v1138_v0 }
  0x72   : > { %864 = vmatmul.mubr.bf16.vlgmr.msra.gmra.mrb[0].mxu0 %v981_v15 }
  0x73   : > { %903 = vmatprep.mubr.msk.bf16.mxu0 %vm1139_vm0, %v1138_v0  ;;  %888 = vmatpush3.bf16.msra.mxu0 %v990_v18 }
  0x74   : > { %889 = vmatprep.subr.bf16.mxu0 %v1138_v0 }
  0x77   : > { %890 = vmatpush3.bf16.msra.mxu0 %v991_v19 }
  0x78   : > { %891 = vmatprep.subr.bf16.mxu0 %v1138_v0 }
  0x7b   : > { %892 = vmatpush3.bf16.msra.mxu0 %v992_v20 }
  0x7c   : > { %893 = vmatprep.subr.bf16.mxu0 %v1138_v0 }
  0x7f   : > { %894 = vmatpush3.bf16.msra.mxu0 %v993_v21 }
  0x80   : > { %895 = vmatprep.subr.bf16.mxu0 %v1138_v0 }
  0x83   : > { %896 = vmatpush3.bf16.msra.mxu0 %v994_v22 }
  0x84   : > { %897 = vmatprep.subr.bf16.mxu0 %v1138_v0 }
  0x87   : > { %898 = vmatpush3.bf16.msra.mxu0 %v995_v23 }
  0x88   : > { %899 = vmatprep.subr.bf16.mxu0 %v1138_v0 }
  0x8b   : > { %900 = vmatpush3.bf16.msra.mxu0 %v996_v34 }
  0x8c   : > { %901 = vmatprep.subr.bf16.mxu0 %v1138_v0 }
  0x8f   : > { %902 = vmatpush3.bf16.msra.mxu0 %v997_v35 }
 0x145   : > { %v424_v25 = vpop.f32.mrb[0].mxu0 }
 0x146   : > { %v425_v26 = vadd.f32 %v784_v24, %v424_v25  ;;  %v865_v27 = vpop.f32.mrb[1].mxu0 }
 0x147   : > { %v427_v28 = vpop.f32.mrb[2].mxu0 }
 0x148   : > { %v428_v29 = vadd.f32 %v784_v24, %v427_v28  ;;  %v866_v30 = vpop.f32.mrb[3].mxu0  ;;  %v431_v31 = vmax.f32 %v425_v26, 0.0 }
 0x14a   : > { %v432_v32 = vmax.f32 %v428_v29, 0.0 }
 0x14c   : > { %v433_v33 = vpack.c.bf16 %v432_v32, %v431_v31 }
 0x14e   : > { %884 = vmatmul.mubr.bf16.vlgmr.msra.gmra.mrb[0].mxu1 %v433_v33 }
 0x221   : > { %v539_v37 = vpop.f32.mrb[0].mxu1 }
 0x222   : > { %v540_v38 = vadd.f32 %v794_v36, %v539_v37  ;;  %v885_v39 = vpop.f32.mrb[1].mxu1 }
 0x223   : > { %v542_v40 = vpop.f32.mrb[2].mxu1 }
 0x224   : > { %v543_v41 = vadd.f32 %v794_v36, %v542_v40  ;;  %v886_v42 = vpop.f32.mrb[3].mxu1  ;;  %v546_v43 = vmax.f32 %v540_v38, 0.0 }
 0x226   : > { %v547_v44 = vmax.f32 %v543_v41, 0.0 }
 0x228   : > { %v548_v45 = vpack.c.bf16 %v547_v44, %v546_v43 }
 0x22a   : > { %904 = vmatmul.mubr.bf16.vlgmr.msra.gmra.mrb[4].mxu0 %v548_v45 }
 0x2fd   : > { %v654_v47 = vpop.f32.mrb[4].mxu0 }
 0x2fe   : > { %v655_v48 = vadd.f32 %v803_v46, %v654_v47  ;;  %v905_v49 = vpop.f32.mrb[5].mxu0 }
 0x2ff   : > { %v657_v50 = vpop.f32.mrb[6].mxu0 }
 0x300   : > { %v812_v51 = vmul.f32 -1.442695, %v655_v48  ;;  %v658_v52 = vadd.f32 %v803_v46, %v657_v50  ;;  %v906_v53 = vpop.f32.mrb[7].mxu0 }
 0x302   : > { %998 = vpow2.f32 %v812_v51  ;;  %v813_v54 = vmul.f32 -1.442695, %v658_v52 }
 0x304   : > { %1000 = vpow2.f32 %v813_v54 }
 0x30c   : > { %v999_v55 = vpop.eup %998 }
 0x30d   : > { %v667_v56 = vadd.f32 1.0, %v999_v55 }
 0x30e   : > { %v1001_v57 = vpop.eup %1000 }
 0x30f   : > { %1002 = vrcp.f32 %v667_v56  ;;  %v668_v58 = vadd.f32 1.0, %v1001_v57 }
 0x311   : > { %1004 = vrcp.f32 %v668_v58 }
 0x319   : > { %v1003_v59 = vpop.eup %1002 }
 0x31a   : > { %673 = vst [vmem:[%s302_s16] sm:$0xff] %v1003_v59 }
 0x31b   : > { %v1005_v60 = vpop.eup %1004 }
 0x31c   : > { %674 = vst [vmem:[%s302_s16 + $0x8] sm:$0xff] %v1005_v60 }
 0x31d   : > { %1075 = shalt.err (!%p1072_p11)
}
 0x31e   : > { %s1076_s29 = scalar_lea.hbm %s1378_s17, 256  ;;  %s1080_s15 = scalar_lea.hbm %s1430_s7, 512 }
 0x31f   : > { %p1077_p13 = scmp.ne.s32.totalorder %s1378_s17, %s1076_s29  ;;  %p1081_p6 = scmp.lt.u32.totalorder %s1378_s17, %s1430_s7 }
 0x320   : > { %p1082_p9 = scmp.lt.u32.totalorder %s1080_s15, %s1076_s29  ;;  %p1084_p10 = scmp.lt.u32.totalorder %s1076_s29, %s1378_s17 }
 0x321   : > { %p1078_p5 = pnand %p1077_p13, %p1444_p1 }
 0x322   : > { %p1083_p12 = por %p1082_p9, %p1081_p6 }
 0x323   : > { %p1079_p0 = pneg %p1078_p5 }
 0x324   : > { %p1085_p2 = por %p1084_p10, %p1083_p12 }
 0x326   : > { %p1086_p3 = pnand %p1085_p2, %p1079_p0 }
 0x328   : > { %1089 = shalt.err (!%p1086_p3)
}
 0x329   : > { %s1141_s16 = smov 128   ;;  %s1142_s18 = smov 8  }
 0x32a   : > { %915 = dma.vmem_to_hbm [thread:$0]  (%p1444_p1), %s1380_s13, 256, %s1378_s17, %s1382_s20, %s1141_s16, %s1141_s16, %s1142_s18  }
 0x32b PF: > { %p932_p4 = scmp.ge.s32.totalorder %s1132_s27, 2  ;;  %s704_s14 = sand.u32 1, %s1120_s24  }
 0x32c   : > { %p1445_p7 = scmp.ne.s32.totalorder %s1436_s12, 0  ;;  %s705_s21 = scalar_lea.sflag [#allocation4], %s704_s14 }
 0x32e   : > { %p925_p8 = pnand %p932_p4, %p1445_p7 }
 0x330   : > { %1115 = dma.done.wait (!%p925_p8), %s705_s21, 256  }
 0x331   : > { %1117 = vsyncadd (!%p925_p8), %s705_s21, 4294967040  ;;  %s1446_s28 = sld [smem:[#allocation11_spill]]  ;;  %p19_p11 = scmp.ge.s32.totalorder %s1208_s30, 4  }
 0x332   : > { %s1447_s24 = smov %s1124_s25  ;;  %s1448_s25 = smov %s1128_s26 }
 0x333   : > { %s1450_s27 = smov %s1208_s30  ;;  %21 = sbr.rel (!%p19_p11) target bundleno = 5 (0x5), region = 92 }
 0x337   : > { %s1449_s26 = smov %s1446_s28 }
 0x33a   :  { %710 = vsyncpa [#allocation3], 1 }
 0x33b   :  { %712 = vsyncpa [#allocation3 + $0x1], 1 }
 0x33c   :  { %713 = vsyncpa [#allocation6], 1 }
 0x33d   :  { %714 = vsyncpa [#allocation4], 1 }
 0x33e   :  { %716 = vsyncpa [#allocation4 + $0x1], 1 }

</bundles_post_ra>
